<compile_context>
chip_gen: v6e
topology: v6e:2x2x1
jax: 0.10.0
libtpu: 0.0.40
codegen_flags: <defaults>
</compile_context>

<pallas_src>
import functools
import math

import jax
import jax.numpy as jnp
from jax.experimental import pallas as pl
from jax.experimental.pallas import tpu as pltpu

LN_EPS = 1e-5

# MXU operand dtype (weights are stored in this dtype by prepare_params()).
# bf16 gives ~4x MXU throughput on v6e/v7x and halves weight DMA / residency;
# elementwise (LN, softmax, residual) math stays f32 everywhere.
COMPUTE_DTYPE = jnp.bfloat16


def _layernorm(x, gamma, beta):
    # x: (S, D); gamma/beta: (1, D). PyTorch LayerNorm over last dim, biased variance.
    mean = jnp.mean(x, axis=-1, keepdims=True)
    xc = x - mean
    var = jnp.mean(xc * xc, axis=-1, keepdims=True)
    inv = jax.lax.rsqrt(var + LN_EPS)
    return xc * inv * gamma + beta


def encoder_block_kernel(
    x_ref,
    wq_ref, bq_ref, wk_ref, bk_ref, wv_ref, bv_ref, wo_ref, bo_ref,
    g1_ref, be1_ref, g2_ref, be2_ref,
    w1_ref, b1_ref, w2_ref, b2_ref,
    out_ref,
    *, kv_chunk, compute_dtype,
):
    cd = compute_dtype
    x = x_ref[...].astype(jnp.float32)          # (S, D) tile for one batch element
    s_len, d = x.shape

    # ---- residual 1: x + Attention(LayerNorm(x)) ----
    xn = _layernorm(x, g1_ref[...], be1_ref[...])
    xn_c = xn.astype(cd)

    # QKV projections. 1/sqrt(d_k) is pre-folded into wq/bq at param-prep time.
    q = jnp.dot(xn_c, wq_ref[...], preferred_element_type=jnp.float32) + bq_ref[...]
    k = jnp.dot(xn_c, wk_ref[...], preferred_element_type=jnp.float32) + bk_ref[...]
    v = jnp.dot(xn_c, wv_ref[...], preferred_element_type=jnp.float32) + bv_ref[...]
    q_c = q.astype(cd)

    # Flash-style online softmax over KV chunks: only (S, kv_chunk) scores live at a
    # time, attention state is O(S*D).  Chunk count is static (small); for very long
    # S switch to lax.fori_loop over scratch refs.
    n_chunks = s_len // kv_chunk
    m_i = jnp.full((s_len, 1), -jnp.inf, jnp.float32)
    l_i = jnp.zeros((s_len, 1), jnp.float32)
    acc = jnp.zeros((s_len, d), jnp.float32)
    for c in range(n_chunks):
        k_c = k[c * kv_chunk:(c + 1) * kv_chunk].astype(cd)
        v_c = v[c * kv_chunk:(c + 1) * kv_chunk].astype(cd)
        # contract the LAST dim of both q and k -> no k.T materialized
        s = jax.lax.dot_general(q_c, k_c, (((1,), (1,)), ((), ())),
                                preferred_element_type=jnp.float32)   # (S, C)
        m_new = jnp.maximum(m_i, jnp.max(s, axis=-1, keepdims=True))
        alpha = jnp.exp(m_i - m_new)
        p = jnp.exp(s - m_new)
        l_i = alpha * l_i + jnp.sum(p, axis=-1, keepdims=True)
        acc = alpha * acc + jnp.dot(p.astype(cd), v_c,
                                    preferred_element_type=jnp.float32)
        m_i = m_new
    # approx=True -> EUP vrcp (its own VLIW slot); accuracy well below bf16 noise.
    attn = acc * pl.reciprocal(l_i, approx=True)

    attn = (jnp.dot(attn.astype(cd), wo_ref[...],
                    preferred_element_type=jnp.float32) + bo_ref[...])
    x1 = x + attn

    # ---- residual 2: x1 + FFN(LayerNorm(x1)) ----
    xn2 = _layernorm(x1, g2_ref[...], be2_ref[...])
    h = (jnp.dot(xn2.astype(cd), w1_ref[...],
                 preferred_element_type=jnp.float32) + b1_ref[...])
    h = jnp.maximum(h, 0.0)                      # ReLU
    ff = (jnp.dot(h.astype(cd), w2_ref[...],
                  preferred_element_type=jnp.float32) + b2_ref[...])

    out_ref[...] = (x1 + ff).astype(out_ref.dtype)


def prepare_params(params, compute_dtype=COMPUTE_DTYPE):
    """One-time (offline) param prep: fold 1/sqrt(d_k) into WQ/bQ and cast the
    matmul weights to the MXU operand dtype.  Biases and LN params stay f32
    (they are applied after f32 accumulation)."""
    d = params["wq"].shape[0]                    # single head: d_k == d_embed
    scale = 1.0 / math.sqrt(d)
    p = dict(params)
    p["wq"] = params["wq"] * scale
    p["bq"] = params["bq"] * scale
    for name in ("wq", "wk", "wv", "wo", "w1", "w2"):
        p[name] = p[name].astype(compute_dtype)
    return p


def encoder_block(x, p):
    """x: (B, S, D) f32; p: prepared params (see prepare_params)."""
    B, S, D = x.shape
    H = p["w1"].shape[1]                         # 4*D
    cd = p["wq"].dtype

    # Flatten (B, S, D) -> (B*S, D): row-major, free; each grid step b sees rows
    # [b*S, (b+1)*S), i.e. exactly one batch element, so attention stays in-batch.
    x2 = x.reshape(B * S, D)

    kv_chunk = min(S, 512)
    assert S % kv_chunk == 0

    def resident(shape):
        # constant-index weights/biases: single-buffered residents
        return pl.BlockSpec(shape, lambda b: (0, 0), pipeline_mode=pl.Buffered(1))

    in_specs = [
        pl.BlockSpec((S, D), lambda b: (b, 0)),        # x tile (double-buffered)
        resident((D, D)), resident((1, D)),            # WQ (pre-scaled), bQ
        resident((D, D)), resident((1, D)),            # WK, bK
        resident((D, D)), resident((1, D)),            # WV, bV
        resident((D, D)), resident((1, D)),            # WO, bO
        resident((1, D)), resident((1, D)),            # ln1 gamma, beta
        resident((1, D)), resident((1, D)),            # ln2 gamma, beta
        resident((D, H)), resident((1, H)),            # FF W1, b1
        resident((H, D)), resident((1, D)),            # FF W2, b2
    ]

    out = pl.pallas_call(
        functools.partial(encoder_block_kernel, kv_chunk=kv_chunk, compute_dtype=cd),
        out_shape=jax.ShapeDtypeStruct((B * S, D), x.dtype),
        grid_spec=pltpu.PrefetchScalarGridSpec(
            num_scalar_prefetch=0,
            grid=(B,),
            in_specs=in_specs,
            out_specs=pl.BlockSpec((S, D), lambda b: (b, 0)),
        ),
        compiler_params=pltpu.CompilerParams(
            # batch steps are independent -> shard across TCs on v7x (no-op on v5e/v6e)
            dimension_semantics=("parallel",),
            # 48 MiB: headroom over scoped defaults, still fits v7x's 64 MiB/TC.
            vmem_limit_bytes=48 * 1024 * 1024,
        ),
    )(
        x2,
        p["wq"], p["bq"], p["wk"], p["bk"], p["wv"], p["bv"], p["wo"], p["bo"],
        p["g1"], p["be1"], p["g2"], p["be2"],
        p["w1"], p["b1"], p["w2"], p["b2"],
    )
    return out.reshape(B, S, D)


def init_params(key, D):
    H = 4 * D
    ks = jax.random.split(key, 6)

    def lin(k, fan_in, fan_out):
        # PyTorch nn.Linear default: U(-1/sqrt(fan_in), 1/sqrt(fan_in));
        # weight returned already transposed to (fan_in, fan_out) for x @ W.
        bound = 1.0 / math.sqrt(fan_in)
        kw, kb = jax.random.split(k)
        wgt = jax.random.uniform(kw, (fan_in, fan_out), jnp.float32, -bound, bound)
        b = jax.random.uniform(kb, (1, fan_out), jnp.float32, -bound, bound)
        return wgt, b

    wq, bq = lin(ks[0], D, D)
    wk, bk = lin(ks[1], D, D)
    wv, bv = lin(ks[2], D, D)
    wo, bo = lin(ks[3], D, D)
    w1, b1 = lin(ks[4], D, H)
    w2, b2 = lin(ks[5], H, D)

    return dict(
        wq=wq, bq=bq, wk=wk, bk=bk, wv=wv, bv=bv, wo=wo, bo=bo,
        g1=jnp.ones((1, D), jnp.float32), be1=jnp.zeros((1, D), jnp.float32),
        g2=jnp.ones((1, D), jnp.float32), be2=jnp.zeros((1, D), jnp.float32),
        w1=w1, b1=b1, w2=w2, b2=b2,
    )


def reference(x, p):
    # pure-JAX f32 reference (raw, unprepared params) for sanity check
    def ln(v, g, b):
        m = jnp.mean(v, -1, keepdims=True)
        c = v - m
        var = jnp.mean(c * c, -1, keepdims=True)
        return c * jax.lax.rsqrt(var + LN_EPS) * g + b

    D = x.shape[-1]
    xn = ln(x, p["g1"], p["be1"])
    q = xn @ p["wq"] + p["bq"]
    k = xn @ p["wk"] + p["bk"]
    v = xn @ p["wv"] + p["bv"]
    s = jnp.einsum("bqd,bkd->bqk", q, k) / math.sqrt(D)
    a = jax.nn.softmax(s, axis=-1)
    att = jnp.einsum("bqk,bkd->bqd", a, v) @ p["wo"] + p["bo"]
    x1 = x + att
    xn2 = ln(x1, p["g2"], p["be2"])
    ff = jnp.maximum(xn2 @ p["w1"] + p["b1"], 0.0) @ p["w2"] + p["b2"]
    return x1 + ff


if __name__ == "__main__":
    key = jax.random.PRNGKey(0)
    kx, kp = jax.random.split(key)

    # batch=2, seq=8, embed_dim=128 (h=1). D is a multiple of 128 -> lane-dense
    # stores and full MXU contraction width.
    B, S, D = 2, 8, 128
    x = jax.random.normal(kx, (B, S, D), jnp.float32)
    params = init_params(kp, D)
    prepared = prepare_params(params)        # once, offline: bf16 weights + folded scale

    out = jax.block_until_ready(encoder_block(x, prepared))
    ref = reference(x, params)               # full-f32 reference

    assert out.shape == (B, S, D)
    err = float(jnp.max(jnp.abs(out - ref)))
    # Tolerance covers bf16 MXU operands plus the approx (EUP) softmax reciprocal
    # against the exact-f32 reference; observed error is ~an order of magnitude lower.
    assert err < 2e-1, err

    print("KERNEL_OK")
</pallas_src>

<mosaic_0001>
module attributes {stable_mosaic.version = 11 : i64} {
  func.func @encoder_block_kernel(%arg0: i32, %arg1: memref<8x128xf32, #tpu.memory_space<vmem>>, %arg2: memref<128x128xbf16, #tpu.memory_space<vmem>>, %arg3: memref<1x128xf32, #tpu.memory_space<vmem>>, %arg4: memref<128x128xbf16, #tpu.memory_space<vmem>>, %arg5: memref<1x128xf32, #tpu.memory_space<vmem>>, %arg6: memref<128x128xbf16, #tpu.memory_space<vmem>>, %arg7: memref<1x128xf32, #tpu.memory_space<vmem>>, %arg8: memref<128x128xbf16, #tpu.memory_space<vmem>>, %arg9: memref<1x128xf32, #tpu.memory_space<vmem>>, %arg10: memref<1x128xf32, #tpu.memory_space<vmem>>, %arg11: memref<1x128xf32, #tpu.memory_space<vmem>>, %arg12: memref<1x128xf32, #tpu.memory_space<vmem>>, %arg13: memref<1x128xf32, #tpu.memory_space<vmem>>, %arg14: memref<128x512xbf16, #tpu.memory_space<vmem>>, %arg15: memref<1x512xf32, #tpu.memory_space<vmem>>, %arg16: memref<512x128xbf16, #tpu.memory_space<vmem>>, %arg17: memref<1x128xf32, #tpu.memory_space<vmem>>, %arg18: memref<8x128xf32, #tpu.memory_space<vmem>>) attributes {dimension_semantics = [#tpu.dimension_semantics<parallel>], iteration_bounds = array<i64: 2>, scalar_prefetch = 0 : i64, scratch_operands = 0 : i64, tpu.core_type = #tpu.core_type<tc>, window_params = [{transform_indices = @transform_0, window_bounds = array<i64: 8, 128>}, {pipeline_mode = #tpu.pipeline_mode<synchronous>, transform_indices = @transform_1, window_bounds = array<i64: 128, 128>}, {pipeline_mode = #tpu.pipeline_mode<synchronous>, transform_indices = @transform_2, window_bounds = array<i64: 1, 128>}, {pipeline_mode = #tpu.pipeline_mode<synchronous>, transform_indices = @transform_3, window_bounds = array<i64: 128, 128>}, {pipeline_mode = #tpu.pipeline_mode<synchronous>, transform_indices = @transform_4, window_bounds = array<i64: 1, 128>}, {pipeline_mode = #tpu.pipeline_mode<synchronous>, transform_indices = @transform_5, window_bounds = array<i64: 128, 128>}, {pipeline_mode = #tpu.pipeline_mode<synchronous>, transform_indices = @transform_6, window_bounds = array<i64: 1, 128>}, {pipeline_mode = #tpu.pipeline_mode<synchronous>, transform_indices = @transform_7, window_bounds = array<i64: 128, 128>}, {pipeline_mode = #tpu.pipeline_mode<synchronous>, transform_indices = @transform_8, window_bounds = array<i64: 1, 128>}, {pipeline_mode = #tpu.pipeline_mode<synchronous>, transform_indices = @transform_9, window_bounds = array<i64: 1, 128>}, {pipeline_mode = #tpu.pipeline_mode<synchronous>, transform_indices = @transform_10, window_bounds = array<i64: 1, 128>}, {pipeline_mode = #tpu.pipeline_mode<synchronous>, transform_indices = @transform_11, window_bounds = array<i64: 1, 128>}, {pipeline_mode = #tpu.pipeline_mode<synchronous>, transform_indices = @transform_12, window_bounds = array<i64: 1, 128>}, {pipeline_mode = #tpu.pipeline_mode<synchronous>, transform_indices = @transform_13, window_bounds = array<i64: 128, 512>}, {pipeline_mode = #tpu.pipeline_mode<synchronous>, transform_indices = @transform_14, window_bounds = array<i64: 1, 512>}, {pipeline_mode = #tpu.pipeline_mode<synchronous>, transform_indices = @transform_15, window_bounds = array<i64: 512, 128>}, {pipeline_mode = #tpu.pipeline_mode<synchronous>, transform_indices = @transform_16, window_bounds = array<i64: 1, 128>}, {transform_indices = @transform_17, window_bounds = array<i64: 8, 128>}]} {
    %c0 = arith.constant 0 : index
    %c0_0 = arith.constant 0 : index
    %0 = vector.load %arg1[%c0, %c0_0] : memref<8x128xf32, #tpu.memory_space<vmem>>, vector<8x128xf32>
    %c0_1 = arith.constant 0 : index
    %c0_2 = arith.constant 0 : index
    %1 = vector.load %arg10[%c0_1, %c0_2] : memref<1x128xf32, #tpu.memory_space<vmem>>, vector<1x128xf32>
    %c0_3 = arith.constant 0 : index
    %c0_4 = arith.constant 0 : index
    %2 = vector.load %arg11[%c0_3, %c0_4] : memref<1x128xf32, #tpu.memory_space<vmem>>, vector<1x128xf32>
    %cst = arith.constant dense<0.000000e+00> : vector<8xf32>
    %3 = vector.multi_reduction <add>, %0, %cst [1] : vector<8x128xf32> to vector<8xf32>
    %4 = vector.shape_cast %3 : vector<8xf32> to vector<8x1xf32>
    %cst_5 = arith.constant 1.280000e+02 : f32
    %5 = vector.broadcast %cst_5 : f32 to vector<8x1xf32>
    %6 = arith.divf %4, %5 : vector<8x1xf32>
    %7 = vector.broadcast %6 : vector<8x1xf32> to vector<8x128xf32>
    %8 = arith.subf %0, %7 : vector<8x128xf32>
    %9 = arith.mulf %8, %8 : vector<8x128xf32>
    %cst_6 = arith.constant dense<0.000000e+00> : vector<8xf32>
    %10 = vector.multi_reduction <add>, %9, %cst_6 [1] : vector<8x128xf32> to vector<8xf32>
    %11 = vector.shape_cast %10 : vector<8xf32> to vector<8x1xf32>
    %cst_7 = arith.constant 1.280000e+02 : f32
    %12 = vector.broadcast %cst_7 : f32 to vector<8x1xf32>
    %13 = arith.divf %11, %12 : vector<8x1xf32>
    %cst_8 = arith.constant 9.99999974E-6 : f32
    %14 = vector.broadcast %cst_8 : f32 to vector<8x1xf32>
    %15 = arith.addf %13, %14 : vector<8x1xf32>
    %16 = math.rsqrt %15 : vector<8x1xf32>
    %17 = vector.broadcast %16 : vector<8x1xf32> to vector<8x128xf32>
    %18 = arith.mulf %8, %17 : vector<8x128xf32>
    %19 = vector.broadcast %1 : vector<1x128xf32> to vector<8x128xf32>
    %20 = arith.mulf %18, %19 : vector<8x128xf32>
    %21 = vector.broadcast %2 : vector<1x128xf32> to vector<8x128xf32>
    %22 = arith.addf %20, %21 : vector<8x128xf32>
    %23 = arith.truncf %22 : vector<8x128xf32> to vector<8x128xbf16>
    %c0_9 = arith.constant 0 : index
    %c0_10 = arith.constant 0 : index
    %24 = vector.load %arg2[%c0_9, %c0_10] : memref<128x128xbf16, #tpu.memory_space<vmem>>, vector<128x128xbf16>
    %cst_11 = arith.constant dense<0.000000e+00> : vector<8x128xf32>
    %25 = tpu.matmul %23, %24, %cst_11 {dimension_numbers = #tpu.dot_dimension_numbers<[1], [0], [0], [1], [0, 0, 1, 1], [], []>} : vector<8x128xbf16>, vector<128x128xbf16>, vector<8x128xf32> -> vector<8x128xf32>
    %c0_12 = arith.constant 0 : index
    %c0_13 = arith.constant 0 : index
    %26 = vector.load %arg3[%c0_12, %c0_13] : memref<1x128xf32, #tpu.memory_space<vmem>>, vector<1x128xf32>
    %27 = vector.broadcast %26 : vector<1x128xf32> to vector<8x128xf32>
    %28 = arith.addf %25, %27 : vector<8x128xf32>
    %c0_14 = arith.constant 0 : index
    %c0_15 = arith.constant 0 : index
    %29 = vector.load %arg4[%c0_14, %c0_15] : memref<128x128xbf16, #tpu.memory_space<vmem>>, vector<128x128xbf16>
    %cst_16 = arith.constant dense<0.000000e+00> : vector<8x128xf32>
    %30 = tpu.matmul %23, %29, %cst_16 {dimension_numbers = #tpu.dot_dimension_numbers<[1], [0], [0], [1], [0, 0, 1, 1], [], []>} : vector<8x128xbf16>, vector<128x128xbf16>, vector<8x128xf32> -> vector<8x128xf32>
    %c0_17 = arith.constant 0 : index
    %c0_18 = arith.constant 0 : index
    %31 = vector.load %arg5[%c0_17, %c0_18] : memref<1x128xf32, #tpu.memory_space<vmem>>, vector<1x128xf32>
    %32 = vector.broadcast %31 : vector<1x128xf32> to vector<8x128xf32>
    %33 = arith.addf %30, %32 : vector<8x128xf32>
    %c0_19 = arith.constant 0 : index
    %c0_20 = arith.constant 0 : index
    %34 = vector.load %arg6[%c0_19, %c0_20] : memref<128x128xbf16, #tpu.memory_space<vmem>>, vector<128x128xbf16>
    %cst_21 = arith.constant dense<0.000000e+00> : vector<8x128xf32>
    %35 = tpu.matmul %23, %34, %cst_21 {dimension_numbers = #tpu.dot_dimension_numbers<[1], [0], [0], [1], [0, 0, 1, 1], [], []>} : vector<8x128xbf16>, vector<128x128xbf16>, vector<8x128xf32> -> vector<8x128xf32>
    %c0_22 = arith.constant 0 : index
    %c0_23 = arith.constant 0 : index
    %36 = vector.load %arg7[%c0_22, %c0_23] : memref<1x128xf32, #tpu.memory_space<vmem>>, vector<1x128xf32>
    %37 = vector.broadcast %36 : vector<1x128xf32> to vector<8x128xf32>
    %38 = arith.addf %35, %37 : vector<8x128xf32>
    %39 = arith.truncf %28 : vector<8x128xf32> to vector<8x128xbf16>
    %cst_24 = arith.constant 0xFF800000 : f32
    %40 = vector.broadcast %cst_24 : f32 to vector<8x1xf32>
    %cst_25 = arith.constant 0.000000e+00 : f32
    %41 = vector.broadcast %cst_25 : f32 to vector<8x1xf32>
    %cst_26 = arith.constant 0.000000e+00 : f32
    %42 = vector.broadcast %cst_26 : f32 to vector<8x128xf32>
    %43 = arith.truncf %33 : vector<8x128xf32> to vector<8x128xbf16>
    %44 = arith.truncf %38 : vector<8x128xf32> to vector<8x128xbf16>
    %cst_27 = arith.constant dense<0.000000e+00> : vector<8x8xf32>
    %45 = tpu.matmul %39, %43, %cst_27 {dimension_numbers = #tpu.dot_dimension_numbers<[1], [1], [0], [0], [0, 0, 1, 0], [], []>} : vector<8x128xbf16>, vector<8x128xbf16>, vector<8x8xf32> -> vector<8x8xf32>
    %cst_28 = arith.constant dense<0xFF800000> : vector<8xf32>
    %46 = vector.multi_reduction <maximumf>, %45, %cst_28 [1] : vector<8x8xf32> to vector<8xf32>
    %47 = vector.shape_cast %46 : vector<8xf32> to vector<8x1xf32>
    %48 = arith.maximumf %40, %47 : vector<8x1xf32>
    %49 = arith.subf %40, %48 : vector<8x1xf32>
    %50 = math.exp %49 : vector<8x1xf32>
    %51 = vector.broadcast %48 : vector<8x1xf32> to vector<8x8xf32>
    %52 = arith.subf %45, %51 : vector<8x8xf32>
    %53 = math.exp %52 : vector<8x8xf32>
    %54 = arith.mulf %50, %41 : vector<8x1xf32>
    %cst_29 = arith.constant dense<0.000000e+00> : vector<8xf32>
    %55 = vector.multi_reduction <add>, %53, %cst_29 [1] : vector<8x8xf32> to vector<8xf32>
    %56 = vector.shape_cast %55 : vector<8xf32> to vector<8x1xf32>
    %57 = arith.addf %54, %56 : vector<8x1xf32>
    %58 = vector.broadcast %50 : vector<8x1xf32> to vector<8x128xf32>
    %59 = arith.mulf %58, %42 : vector<8x128xf32>
    %60 = arith.truncf %53 : vector<8x8xf32> to vector<8x8xbf16>
    %cst_30 = arith.constant dense<0.000000e+00> : vector<8x128xf32>
    %61 = tpu.matmul %60, %44, %cst_30 {dimension_numbers = #tpu.dot_dimension_numbers<[1], [0], [0], [1], [0, 0, 1, 1], [], []>} : vector<8x8xbf16>, vector<8x128xbf16>, vector<8x128xf32> -> vector<8x128xf32>
    %62 = arith.addf %59, %61 : vector<8x128xf32>
    %63 = tpu.reciprocal %57 {approx = true} : vector<8x1xf32> -> vector<8x1xf32>
    %64 = vector.broadcast %63 : vector<8x1xf32> to vector<8x128xf32>
    %65 = arith.mulf %62, %64 : vector<8x128xf32>
    %66 = arith.truncf %65 : vector<8x128xf32> to vector<8x128xbf16>
    %c0_31 = arith.constant 0 : index
    %c0_32 = arith.constant 0 : index
    %67 = vector.load %arg8[%c0_31, %c0_32] : memref<128x128xbf16, #tpu.memory_space<vmem>>, vector<128x128xbf16>
    %cst_33 = arith.constant dense<0.000000e+00> : vector<8x128xf32>
    %68 = tpu.matmul %66, %67, %cst_33 {dimension_numbers = #tpu.dot_dimension_numbers<[1], [0], [0], [1], [0, 0, 1, 1], [], []>} : vector<8x128xbf16>, vector<128x128xbf16>, vector<8x128xf32> -> vector<8x128xf32>
    %c0_34 = arith.constant 0 : index
    %c0_35 = arith.constant 0 : index
    %69 = vector.load %arg9[%c0_34, %c0_35] : memref<1x128xf32, #tpu.memory_space<vmem>>, vector<1x128xf32>
    %70 = vector.broadcast %69 : vector<1x128xf32> to vector<8x128xf32>
    %71 = arith.addf %68, %70 : vector<8x128xf32>
    %72 = arith.addf %0, %71 : vector<8x128xf32>
    %c0_36 = arith.constant 0 : index
    %c0_37 = arith.constant 0 : index
    %73 = vector.load %arg12[%c0_36, %c0_37] : memref<1x128xf32, #tpu.memory_space<vmem>>, vector<1x128xf32>
    %c0_38 = arith.constant 0 : index
    %c0_39 = arith.constant 0 : index
    %74 = vector.load %arg13[%c0_38, %c0_39] : memref<1x128xf32, #tpu.memory_space<vmem>>, vector<1x128xf32>
    %cst_40 = arith.constant dense<0.000000e+00> : vector<8xf32>
    %75 = vector.multi_reduction <add>, %72, %cst_40 [1] : vector<8x128xf32> to vector<8xf32>
    %76 = vector.shape_cast %75 : vector<8xf32> to vector<8x1xf32>
    %cst_41 = arith.constant 1.280000e+02 : f32
    %77 = vector.broadcast %cst_41 : f32 to vector<8x1xf32>
    %78 = arith.divf %76, %77 : vector<8x1xf32>
    %79 = vector.broadcast %78 : vector<8x1xf32> to vector<8x128xf32>
    %80 = arith.subf %72, %79 : vector<8x128xf32>
    %81 = arith.mulf %80, %80 : vector<8x128xf32>
    %cst_42 = arith.constant dense<0.000000e+00> : vector<8xf32>
    %82 = vector.multi_reduction <add>, %81, %cst_42 [1] : vector<8x128xf32> to vector<8xf32>
    %83 = vector.shape_cast %82 : vector<8xf32> to vector<8x1xf32>
    %cst_43 = arith.constant 1.280000e+02 : f32
    %84 = vector.broadcast %cst_43 : f32 to vector<8x1xf32>
    %85 = arith.divf %83, %84 : vector<8x1xf32>
    %cst_44 = arith.constant 9.99999974E-6 : f32
    %86 = vector.broadcast %cst_44 : f32 to vector<8x1xf32>
    %87 = arith.addf %85, %86 : vector<8x1xf32>
    %88 = math.rsqrt %87 : vector<8x1xf32>
    %89 = vector.broadcast %88 : vector<8x1xf32> to vector<8x128xf32>
    %90 = arith.mulf %80, %89 : vector<8x128xf32>
    %91 = vector.broadcast %73 : vector<1x128xf32> to vector<8x128xf32>
    %92 = arith.mulf %90, %91 : vector<8x128xf32>
    %93 = vector.broadcast %74 : vector<1x128xf32> to vector<8x128xf32>
    %94 = arith.addf %92, %93 : vector<8x128xf32>
    %95 = arith.truncf %94 : vector<8x128xf32> to vector<8x128xbf16>
    %c0_45 = arith.constant 0 : index
    %c0_46 = arith.constant 0 : index
    %96 = vector.load %arg14[%c0_45, %c0_46] : memref<128x512xbf16, #tpu.memory_space<vmem>>, vector<128x512xbf16>
    %cst_47 = arith.constant dense<0.000000e+00> : vector<8x512xf32>
    %97 = tpu.matmul %95, %96, %cst_47 {dimension_numbers = #tpu.dot_dimension_numbers<[1], [0], [0], [1], [0, 0, 1, 1], [], []>} : vector<8x128xbf16>, vector<128x512xbf16>, vector<8x512xf32> -> vector<8x512xf32>
    %c0_48 = arith.constant 0 : index
    %c0_49 = arith.constant 0 : index
    %98 = vector.load %arg15[%c0_48, %c0_49] : memref<1x512xf32, #tpu.memory_space<vmem>>, vector<1x512xf32>
    %99 = vector.broadcast %98 : vector<1x512xf32> to vector<8x512xf32>
    %100 = arith.addf %97, %99 : vector<8x512xf32>
    %cst_50 = arith.constant 0.000000e+00 : f32
    %101 = vector.broadcast %cst_50 : f32 to vector<8x512xf32>
    %102 = arith.maximumf %100, %101 : vector<8x512xf32>
    %103 = arith.truncf %102 : vector<8x512xf32> to vector<8x512xbf16>
    %c0_51 = arith.constant 0 : index
    %c0_52 = arith.constant 0 : index
    %104 = vector.load %arg16[%c0_51, %c0_52] : memref<512x128xbf16, #tpu.memory_space<vmem>>, vector<512x128xbf16>
    %cst_53 = arith.constant dense<0.000000e+00> : vector<8x128xf32>
    %105 = tpu.matmul %103, %104, %cst_53 {dimension_numbers = #tpu.dot_dimension_numbers<[1], [0], [0], [1], [0, 0, 1, 1], [], []>} : vector<8x512xbf16>, vector<512x128xbf16>, vector<8x128xf32> -> vector<8x128xf32>
    %c0_54 = arith.constant 0 : index
    %c0_55 = arith.constant 0 : index
    %106 = vector.load %arg17[%c0_54, %c0_55] : memref<1x128xf32, #tpu.memory_space<vmem>>, vector<1x128xf32>
    %107 = vector.broadcast %106 : vector<1x128xf32> to vector<8x128xf32>
    %108 = arith.addf %105, %107 : vector<8x128xf32>
    %109 = arith.addf %72, %108 : vector<8x128xf32>
    %c0_56 = arith.constant 0 : index
    %c0_57 = arith.constant 0 : index
    %110 = vector.load %arg18[%c0_56, %c0_57] : memref<8x128xf32, #tpu.memory_space<vmem>>, vector<8x128xf32>
    tpu.vector_store %arg18[%c0_56, %c0_57], %109 {strides = array<i32>} : memref<8x128xf32, #tpu.memory_space<vmem>>, vector<8x128xf32>,
    return
  }
  func.func @transform_0(%arg0: i32) -> (i32, i32) {
    %c0_i32 = arith.constant 0 : i32
    %c0_i32_0 = arith.constant 0 : i32
    return %arg0, %c0_i32 : i32, i32
  }
  func.func @transform_1(%arg0: i32) -> (i32, i32) {
    %c0_i32 = arith.constant 0 : i32
    %c0_i32_0 = arith.constant 0 : i32
    %c0_i32_1 = arith.constant 0 : i32
    return %c0_i32, %c0_i32_0 : i32, i32
  }
  func.func @transform_2(%arg0: i32) -> (i32, i32) {
    %c0_i32 = arith.constant 0 : i32
    %c0_i32_0 = arith.constant 0 : i32
    %c0_i32_1 = arith.constant 0 : i32
    return %c0_i32, %c0_i32_0 : i32, i32
  }
  func.func @transform_3(%arg0: i32) -> (i32, i32) {
    %c0_i32 = arith.constant 0 : i32
    %c0_i32_0 = arith.constant 0 : i32
    %c0_i32_1 = arith.constant 0 : i32
    return %c0_i32, %c0_i32_0 : i32, i32
  }
  func.func @transform_4(%arg0: i32) -> (i32, i32) {
    %c0_i32 = arith.constant 0 : i32
    %c0_i32_0 = arith.constant 0 : i32
    %c0_i32_1 = arith.constant 0 : i32
    return %c0_i32, %c0_i32_0 : i32, i32
  }
  func.func @transform_5(%arg0: i32) -> (i32, i32) {
    %c0_i32 = arith.constant 0 : i32
    %c0_i32_0 = arith.constant 0 : i32
    %c0_i32_1 = arith.constant 0 : i32
    return %c0_i32, %c0_i32_0 : i32, i32
  }
  func.func @transform_6(%arg0: i32) -> (i32, i32) {
    %c0_i32 = arith.constant 0 : i32
    %c0_i32_0 = arith.constant 0 : i32
    %c0_i32_1 = arith.constant 0 : i32
    return %c0_i32, %c0_i32_0 : i32, i32
  }
  func.func @transform_7(%arg0: i32) -> (i32, i32) {
    %c0_i32 = arith.constant 0 : i32
    %c0_i32_0 = arith.constant 0 : i32
    %c0_i32_1 = arith.constant 0 : i32
    return %c0_i32, %c0_i32_0 : i32, i32
  }
  func.func @transform_8(%arg0: i32) -> (i32, i32) {
    %c0_i32 = arith.constant 0 : i32
    %c0_i32_0 = arith.constant 0 : i32
    %c0_i32_1 = arith.constant 0 : i32
    return %c0_i32, %c0_i32_0 : i32, i32
  }
  func.func @transform_9(%arg0: i32) -> (i32, i32) {
    %c0_i32 = arith.constant 0 : i32
    %c0_i32_0 = arith.constant 0 : i32
    %c0_i32_1 = arith.constant 0 : i32
    return %c0_i32, %c0_i32_0 : i32, i32
  }
  func.func @transform_10(%arg0: i32) -> (i32, i32) {
    %c0_i32 = arith.constant 0 : i32
    %c0_i32_0 = arith.constant 0 : i32
    %c0_i32_1 = arith.constant 0 : i32
    return %c0_i32, %c0_i32_0 : i32, i32
  }
  func.func @transform_11(%arg0: i32) -> (i32, i32) {
    %c0_i32 = arith.constant 0 : i32
    %c0_i32_0 = arith.constant 0 : i32
    %c0_i32_1 = arith.constant 0 : i32
    return %c0_i32, %c0_i32_0 : i32, i32
  }
  func.func @transform_12(%arg0: i32) -> (i32, i32) {
    %c0_i32 = arith.constant 0 : i32
    %c0_i32_0 = arith.constant 0 : i32
    %c0_i32_1 = arith.constant 0 : i32
    return %c0_i32, %c0_i32_0 : i32, i32
  }
  func.func @transform_13(%arg0: i32) -> (i32, i32) {
    %c0_i32 = arith.constant 0 : i32
    %c0_i32_0 = arith.constant 0 : i32
    %c0_i32_1 = arith.constant 0 : i32
    return %c0_i32, %c0_i32_0 : i32, i32
  }
  func.func @transform_14(%arg0: i32) -> (i32, i32) {
    %c0_i32 = arith.constant 0 : i32
    %c0_i32_0 = arith.constant 0 : i32
    %c0_i32_1 = arith.constant 0 : i32
    return %c0_i32, %c0_i32_0 : i32, i32
  }
  func.func @transform_15(%arg0: i32) -> (i32, i32) {
    %c0_i32 = arith.constant 0 : i32
    %c0_i32_0 = arith.constant 0 : i32
    %c0_i32_1 = arith.constant 0 : i32
    return %c0_i32, %c0_i32_0 : i32, i32
  }
  func.func @transform_16(%arg0: i32) -> (i32, i32) {
    %c0_i32 = arith.constant 0 : i32
    %c0_i32_0 = arith.constant 0 : i32
    %c0_i32_1 = arith.constant 0 : i32
    return %c0_i32, %c0_i32_0 : i32, i32
  }
  func.func @transform_17(%arg0: i32) -> (i32, i32) {
    %c0_i32 = arith.constant 0 : i32
    %c0_i32_0 = arith.constant 0 : i32
    return %arg0, %c0_i32 : i32, i32
  }
}

</mosaic_0001>

<bundles_post_ra>
// kernel: tpu_custom_call.1
= control target key start
LH: loop header
LB: loop body
LE: loop exit
PB: predicated region body
PF: predicated region fallthrough
CT: control target
= control target key end

     0   :  { %s3295_s0 = inlined_call_operand.hbm [shape: f32[16,128], index: 0, kind: input, shape index: {}]   ;;  %s3296_s1 = inlined_call_operand.hbm [shape: bf16[128,128], index: 1, kind: input, shape index: {}]   ;;  %s3297_s2 = inlined_call_operand.vmem [shape: f32[1,128], index: 2, kind: input, shape index: {}]   ;;  %s3298_s3 = inlined_call_operand.hbm [shape: bf16[128,128], index: 3, kind: input, shape index: {}]   ;;  %s3299_s4 = inlined_call_operand.vmem [shape: f32[1,128], index: 4, kind: input, shape index: {}]   ;;  %s3300_s5 = inlined_call_operand.hbm [shape: bf16[128,128], index: 5, kind: input, shape index: {}]   ;;  %s3301_s6 = inlined_call_operand.vmem [shape: f32[1,128], index: 6, kind: input, shape index: {}]   ;;  %s3302_s7 = inlined_call_operand.hbm [shape: bf16[128,128], index: 7, kind: input, shape index: {}]   ;;  %s3303_s8 = inlined_call_operand.vmem [shape: f32[1,128], index: 8, kind: input, shape index: {}]   ;;  %s3304_s9 = inlined_call_operand.vmem [shape: f32[1,128], index: 9, kind: input, shape index: {}]   ;;  %s3305_s10 = inlined_call_operand.vmem [shape: f32[1,128], index: 10, kind: input, shape index: {}]   ;;  %s3306_s11 = inlined_call_operand.vmem [shape: f32[1,128], index: 11, kind: input, shape index: {}]   ;;  %s3307_s12 = inlined_call_operand.vmem [shape: f32[1,128], index: 12, kind: input, shape index: {}]   ;;  %s3308_s13 = inlined_call_operand.hbm [shape: bf16[128,512], index: 13, kind: input, shape index: {}]   ;;  %s3309_s14 = inlined_call_operand.vmem [shape: f32[1,512], index: 14, kind: input, shape index: {}]   ;;  %s3310_s15 = inlined_call_operand.hbm [shape: bf16[512,128], index: 15, kind: input, shape index: {}]   ;;  %s3311_s16 = inlined_call_operand.vmem [shape: f32[1,128], index: 16, kind: input, shape index: {}]   ;;  %s3312_s17 = inlined_call_operand.hbm [shape: f32[16,128], index: 17, kind: output, shape index: {}]  }
   0x1   :  { %3326 = sst [smem:[#allocation23_spill]] %s3295_s0 }
   0x2   :  { %3327 = sst [smem:[#allocation24_spill]] %s3296_s1 }
   0x3   :  { %3328 = sst [smem:[#allocation25_spill]] %s3298_s3 }
   0x4   :  { %3329 = sst [smem:[#allocation26_spill]] %s3300_s5 }
   0x5   :  { %3330 = sst [smem:[#allocation27_spill]] %s3302_s7 }
   0x6   :  { %3331 = sst [smem:[#allocation28_spill]] %s3308_s13 }
   0x7   :  { %3332 = sst [smem:[#allocation29_spill]] %s3309_s14 }
   0x8   :  { %3333 = sst [smem:[#allocation30_spill]] %s3310_s15 }
   0x9   :  { %3334 = sst [smem:[#allocation31_spill]] %s3311_s16 }
   0xa   :  { %3335 = sst [smem:[#allocation32_spill]] %s3312_s17 }
   0xb   :  { %22 = vsyncpa [#allocation3], 0 }
   0xc   :  { %24 = vsyncpa [#allocation3 + $0x1], 0 }
   0xd   :  { %25 = vsyncpa [#allocation6], 0 }
   0xe   :  { %26 = vsyncpa [#allocation9], 0 }
   0xf   :  { %27 = vsyncpa [#allocation12], 0 }
  0x10   :  { %28 = vsyncpa [#allocation4], 0 }
  0x11   :  { %30 = vsyncpa [#allocation4 + $0x1], 0  ;;  %s2964_s24 = smov 0   ;;  %s2966_s25 = smov 0  }
  0x12   :  { %s2968_s26 = smov 0   ;;  %s2970_s27 = smov 0  }
  0x13 LB: > { %3336 = sst [smem:[#allocation20_spill]] %s2853_s26  ;;  %s2859_s28 = smov [#allocation5]   ;;  %s2857_s27 = sphi %s2970_s27, %s3370_s27   ;;  %s2853_s26 = sphi %s2968_s26, %s3375_s26   ;;  %s2849_s25 = sphi %s2966_s25, %s3374_s25   ;;  %s2845_s24 = sphi %s2964_s24, %s3373_s24  }
  0x14   : > { %s441_s29 = sshll.u32 %s2859_s28, 4  ;;  %s2985_s0 = sadd.s32 4294967295, %s2857_s27   ;;  %s442_s29 = int_to_ptr.vmem [resolvable:$true] %s441_s29 }
  0x15   : > { %p2056_p0 = scmp.ge.s32.totalorder %s2857_s27, 1  ;;  %p3319_p1 = scmp.eq.s32.totalorder %s2985_s0, 0 }
  0x16   : > { %p429_p2 = scmp.lt.s32.totalorder %s2857_s27, 3  ;;  %s2860_s18 = smov [#allocation8]  }
  0x17   : > { %s473_s19 = sshll.u32 %s2860_s18, 4  ;;  %s2861_s20 = smov [#allocation11]   ;;  %s3003_s19 = int_to_ptr.vmem [resolvable:$true] %s473_s19 }
  0x18   : > { %p2990_p3 = pnand %p2056_p0, %p429_p2  ;;  %s517_s21 = sshll.u32 %s2861_s20, 4  ;;  %s3005_s21 = int_to_ptr.vmem [resolvable:$true] %s517_s21 }
  0x19   : > { %s2608_s23 = scalar_lea.vmem %s442_s29, 1024  ;;  %p2616_p11 = scmp.lt.s32.totalorder %s442_s29, %s442_s29 }
  0x1a   : > { %s3337_s30 = scalar_select %p2990_p3, 1, 0 }
  0x1b   : > { %p2389_p5 = pneg %p2990_p3  ;;  %p2609_p8 = scmp.ne.s32.totalorder %s442_s29, %s2608_s23 }
  0x1c   : > { %p2617_p12 = scmp.lt.s32.totalorder %s2608_s23, %s2608_s23 }
  0x1d   : > { %p2999_p6 = pnand %p2389_p5, %p3319_p1 }
  0x1e   : > { %p2618_p13 = por %p2617_p12, %p2616_p11 }
  0x1f   : > { %p3009_p7 = pneg %p2999_p6 }
  0x21   : > { %p2611_p9 = pnand %p2609_p8, %p3009_p7 }
  0x23   : > { %p2612_p10 = pneg %p2611_p9 }
  0x25   : > { %p2619_p0 = pnand %p2618_p13, %p2612_p10 }
  0x27   : > { %2622 = shalt.err (!%p2619_p0)
}
  0x28   : > { %s3315_s28 = smov 64   ;;  %s3317_s18 = smov 4  }
  0x29   : > { %s3340_s16 = sld [smem:[#allocation24_spill]]  ;;  %s2634_s14 = scalar_lea.vmem %s3003_s19, 1024 }
  0x2a   : > { %p2635_p2 = scmp.ne.s32.totalorder %s3003_s19, %s2634_s14  ;;  %p2642_p9 = scmp.lt.s32.totalorder %s3003_s19, %s3003_s19 }
  0x2b   : > { %p2643_p10 = scmp.lt.s32.totalorder %s2634_s14, %s2634_s14 }
  0x2c   : > { %p2637_p5 = pnand %p2635_p2, %p3009_p7 }
  0x2d   : > { %p2644_p11 = por %p2643_p10, %p2642_p9 }
  0x2e   : > { %p2638_p8 = pneg %p2637_p5 }
  0x2f   : > { %2392 = dma.hbm_to_vmem [thread:$0]  (!%p2999_p6), %s3340_s16, 1024, %s442_s29, [#allocation6], %s3315_s28, %s3315_s28, %s3317_s18  }
  0x30   : > { %p2645_p12 = pnand %p2644_p11, %p2638_p8 }
  0x32   : > { %2648 = shalt.err (!%p2645_p12)
}
  0x33   : > { %s3341_s5 = sld [smem:[#allocation26_spill]]  ;;  %s2660_s16 = scalar_lea.vmem %s3005_s21, 4096 }
  0x34   : > { %p2661_p13 = scmp.ne.s32.totalorder %s3005_s21, %s2660_s16  ;;  %p2668_p5 = scmp.lt.s32.totalorder %s3005_s21, %s3005_s21 }
  0x35   : > { %p2669_p8 = scmp.lt.s32.totalorder %s2660_s16, %s2660_s16 }
  0x36   : > { %p2663_p0 = pnand %p2661_p13, %p3009_p7 }
  0x37   : > { %p2670_p9 = por %p2669_p8, %p2668_p5 }
  0x38   : > { %p2664_p2 = pneg %p2663_p0 }
  0x39   : > { %2398 = dma.hbm_to_vmem [thread:$0]  (!%p2999_p6), %s3341_s5, 1024, %s3003_s19, [#allocation9], %s3315_s28, %s3315_s28, %s3317_s18  }
  0x3a   : > { %p2671_p10 = pnand %p2670_p9, %p2664_p2 }
  0x3c   : > { %2674 = shalt.err (!%p2671_p10)
}
  0x3d   : > { %s2864_s14 = smov 256   ;;  %s2865_s29 = smov 16  }
  0x3e   : > { %s3342_s13 = sld [smem:[#allocation28_spill]]  ;;  %s2866_s19 = smov [#allocation7]  }
  0x3f   : > { %s457_s17 = sshll.u32 %s2866_s19, 4  ;;  %s2867_s28 = smov [#allocation10]   ;;  %s458_s17 = int_to_ptr.vmem [resolvable:$true] %s457_s17 }
  0x40   : > { %s489_s18 = sshll.u32 %s2867_s28, 4  ;;  %s2686_s5 = scalar_lea.vmem %s458_s17, 1024  ;;  %s490_s18 = int_to_ptr.vmem [resolvable:$true] %s489_s18 }
  0x41   : > { %p2687_p11 = scmp.ne.s32.totalorder %s458_s17, %s2686_s5  ;;  %p2694_p0 = scmp.lt.s32.totalorder %s458_s17, %s458_s17 }
  0x42   : > { %p2695_p2 = scmp.lt.s32.totalorder %s2686_s5, %s2686_s5 }
  0x43   : > { %p2689_p12 = pnand %p2687_p11, %p3009_p7 }
  0x44   : > { %2404 = dma.hbm_to_vmem [thread:$0]  (!%p2999_p6), %s3342_s13, 4096, %s3005_s21, [#allocation12], %s2864_s14, %s2864_s14, %s2865_s29  }
  0x45   : > { %p2690_p13 = pneg %p2689_p12  ;;  %p2696_p5 = por %p2695_p2, %p2694_p0 }
  0x47   : > { %p2697_p8 = pnand %p2696_p5, %p2690_p13 }
  0x49   : > { %2700 = shalt.err (!%p2697_p8)
}
  0x4a   : > { %s3343_s16 = smov 4   ;;  %s3344_s20 = smov 64  }
  0x4b   : > { %s3345_s3 = sld [smem:[#allocation25_spill]]  ;;  %s2712_s28 = scalar_lea.vmem %s490_s18, 1024 }
  0x4c   : > { %p2713_p9 = scmp.ne.s32.totalorder %s490_s18, %s2712_s28  ;;  %p2720_p12 = scmp.lt.s32.totalorder %s490_s18, %s490_s18 }
  0x4d   : > { %p2721_p0 = scmp.lt.s32.totalorder %s2712_s28, %s2712_s28 }
  0x4e   : > { %p2715_p10 = pnand %p2713_p9, %p3009_p7 }
  0x4f   : > { %p2722_p13 = por %p2721_p0, %p2720_p12 }
  0x50   : > { %p2716_p11 = pneg %p2715_p10 }
  0x51   : > { %2395 = dma.hbm_to_vmem [thread:$0]  (!%p2999_p6), %s3345_s3, 1024, %s458_s17, [#allocation6], %s3344_s20, %s3344_s20, %s3343_s16  }
  0x52   : > { %p2723_p2 = pnand %p2722_p13, %p2716_p11 }
  0x54   : > { %2726 = shalt.err (!%p2723_p2)
}
  0x55   : > { %s3346_s7 = sld [smem:[#allocation27_spill]]  ;;  %s2868_s23 = smov [#allocation13]  }
  0x56   : > { %s533_s19 = sshll.u32 %s2868_s23, 4  ;;  %s534_s19 = int_to_ptr.vmem [resolvable:$true] %s533_s19 }
  0x57   : > { %s2738_s17 = scalar_lea.vmem %s534_s19, 4096  ;;  %p2746_p10 = scmp.lt.s32.totalorder %s534_s19, %s534_s19 }
  0x58   : > { %p2739_p5 = scmp.ne.s32.totalorder %s534_s19, %s2738_s17  ;;  %p2747_p11 = scmp.lt.s32.totalorder %s2738_s17, %s2738_s17 }
  0x5a   : > { %p2741_p8 = pnand %p2739_p5, %p3009_p7  ;;  %p2748_p12 = por %p2747_p11, %p2746_p10 }
  0x5b   : > { %2401 = dma.hbm_to_vmem [thread:$0]  (!%p2999_p6), %s3346_s7, 1024, %s490_s18, [#allocation9], %s3344_s20, %s3344_s20, %s3343_s16  }
  0x5c   : > { %p2742_p9 = pneg %p2741_p8 }
  0x5e   : > { %p2749_p0 = pnand %p2748_p12, %p2742_p9 }
  0x60   : > { %2752 = shalt.err (!%p2749_p0)
}
  0x61   : > { %s3347_s15 = sld [smem:[#allocation30_spill]]  ;;  %s2055_s1 = sadd.s32 4294967294, %s2857_s27  }
  0x62   : > { %s3082_s22 = sadd.s32 1, %s2857_s27   ;;  %s43_s28 = sadd.s32 1, %s2853_s26 }
  0x63   : > { %3348 = sst [smem:[#allocation21_spill]] %s3082_s22  ;;  %s40_s14 = ssub.s32 %s2857_s27, %s3082_s22 }
  0x64   : > { %p41_p7 = scmp.eq.s32.totalorder %s40_s14, 0  ;;  %p50_p13 = scmp.ne.s32.totalorder %s2853_s26, %s2849_s25 }
  0x65   : > { %p51_p2 = scmp.eq.s32.totalorder %s2857_s27, 0  ;;  %p56_p5 = scmp.ne.s32.totalorder %s2849_s25, %s2845_s24 }
  0x66   : > { %s3093_s5 = scalar_select %p41_p7, %s2853_s26, %s43_s28  }
  0x67   : > { %2407 = dma.hbm_to_vmem [thread:$0]  (!%p2999_p6), %s3347_s15, 4096, %s534_s19, [#allocation12], %s3344_s20, %s3344_s20, %s3343_s16  }
  0x68   : > { %3349 = sst [smem:[#allocation22_spill]] %s3093_s5  ;;  %p3095_p8 = por %p51_p2, %p50_p13 }
  0x69   : > { %p3101_p6 = por %p3319_p1, %p56_p5  ;;  %p416_p9 = scmp.eq.s32.totalorder %s2985_s0, 1 }
  0x6a   : > { %p422_p10 = scmp.eq.s32.totalorder %s2055_s1, 1  ;;  %p2422_p11 = scmp.lt.s32.totalorder %s2857_s27, 2 }
  0x6b   : > { %s3351_s16 = scalar_select %p3101_p6, 1, 0 }
  0x6c   : > { %s550_s20 = sand.u32 1, %s2853_s26   ;;  %p3108_p12 = por %p416_p9, %p50_p13 }
  0x6d   : > { %p3112_p0 = por %p422_p10, %p56_p5  ;;  %s2064_s17 = sshll.u32 %s550_s20, 3 }
  0x6e   : > { %s3352_s23 = scalar_select %p3108_p12, 1, 0 }
  0x6f   : > { %s3353_s19 = scalar_select %p3112_p0, 1, 0 }
  0x70   : > { %s2065_s21 = sshll.u32 %s2857_s27, 7  ;;  %s3354_s28 = sld [smem:[#allocation23_spill]] }
  0x71   : > { %s554_s1 = scalar_lea.vmem [#allocation2], %s2064_s17  ;;  %p3124_p7 = pnand %p2422_p11, %p3095_p8 }
  0x72   : > { %s561_s7 = sshll.u32 %s554_s1, 4  ;;  %s551_s15 = scalar_lea.sflag [#allocation3], %s550_s20  ;;  %s562_s7 = int_to_ptr.vmem [resolvable:$true] %s561_s7 }
  0x73   : > { %p2755_p2 = pneg %p3124_p7 }
  0x76   : > { %s3120_s3 = scalar_lea.hbm %s3354_s28, %s2065_s21  ;;  %s2758_s14 = scalar_lea.hbm %s3354_s28, 256 }
  0x77   : > { %s2753_s5 = scalar_lea.hbm %s3120_s3, 128  ;;  %p2759_p10 = scmp.lt.s32.totalorder %s3120_s3, %s3354_s28 }
  0x78   : > { %p2754_p13 = scmp.ne.s32.totalorder %s3120_s3, %s2753_s5  ;;  %p2760_p8 = scmp.lt.s32.totalorder %s2758_s14, %s2753_s5 }
  0x7a   : > { %p2756_p5 = pnand %p2755_p2, %p2754_p13  ;;  %p2761_p11 = por %p2760_p8, %p2759_p10 }
  0x7c   : > { %p2757_p9 = pneg %p2756_p5 }
  0x7e   : > { %p2762_p4 = pnand %p2761_p11, %p2757_p9 }
  0x80   : > { %2765 = shalt.err (!%p2762_p4)
}
  0x81   : > { %s2766_s29 = scalar_lea.vmem %s562_s7, 128  ;;  %s2869_s20 = smov [#allocation2]  }
  0x82   : > { %p2767_p1 = scmp.ne.s32.totalorder %s562_s7, %s2766_s29  ;;  %s2771_s26 = sshll.u32 %s2869_s20, 4  ;;  %s2772_s26 = int_to_ptr.vmem [resolvable:$false] %s2771_s26 }
  0x83   : > { %s2773_s22 = scalar_lea.vmem %s2772_s26, 256  ;;  %p2774_p13 = scmp.lt.s32.totalorder %s562_s7, %s2772_s26 }
  0x84   : > { %p2769_p0 = pnand %p2767_p1, %p2755_p2  ;;  %p2775_p5 = scmp.lt.s32.totalorder %s2773_s22, %s2766_s29 }
  0x86   : > { %p2770_p12 = pneg %p2769_p0  ;;  %p2776_p6 = por %p2775_p5, %p2774_p13 }
  0x88   : > { %p2777_p3 = pnand %p2776_p6, %p2770_p12 }
  0x8a   : > { %2780 = shalt.err (!%p2777_p3)
}
  0x8b   : > { %2411 = dma.hbm_to_vmem [thread:$0]  (!%p3124_p7), %s3120_s3, 128, %s562_s7, %s551_s15  }
  0x8c   : > { %p3356_p9 = scmp.ne.s32.totalorder %s3337_s30, 0 }
  0x8d   : > { %s3145_s5 = sand.u32 (!%p3356_p9), 1, %s2849_s25   ;;  %p3357_p1 = scmp.ne.s32.totalorder (!%p3356_p9), %s3351_s16, 0 }
  0x8e   : > { %570 = sbr.rel (%p3356_p9) target bundleno = 2144 (0x860), region = 88  ;;  %s2067_s21 = sshll.u32 (!%p3356_p9), %s3145_s5, 3 }
  0x8f   : > { %s573_s26 = scalar_lea.sflag (!%p3356_p9), [#allocation3], %s3145_s5  ;;  %s576_s22 = scalar_lea.vmem (!%p3356_p9), [#allocation2], %s2067_s21 }
  0x93   : > { %2824 = dma.done.wait (%p3357_p1), %s573_s26, 128  }
  0x94   : > { %2826 = vsyncadd (%p3357_p1), %s573_s26, 4294967168  ;;  %p3358_p3 = scmp.eq.s32.totalorder %s2985_s0, 0 }
  0x96   : > { %2828 = dma.done.wait (%p3358_p3), [#allocation6], 2048   ;;  %p3359_p4 = pmov %p3358_p3 }
  0x97   : > { %p3360_p6 = pmov %p3358_p3 }
  0x98   : > { %2830 = vsyncadd (%p3359_p4), [#allocation6], 4294965248 }
  0x99   : > { %2832 = dma.done.wait (%p3360_p6), [#allocation9], 2048   ;;  %p3361_p12 = pmov %p3358_p3 }
  0x9a   : > { %p3362_p0 = pmov %p3358_p3 }
  0x9b   : > { %2834 = vsyncadd (%p3361_p12), [#allocation9], 4294965248 }
  0x9c   : > { %2836 = dma.done.wait (%p3362_p0), [#allocation12], 8192   ;;  %p3363_p7 = pmov %p3362_p0 }
  0x9d   : > { %v3167_v0 = vld [vmem:[%s576_s22] sm:$0xff]  ;;  %v2870_v4 = vmov 0.0   ;;  %v2479_v10 = vld [vmem:[#allocation5 + $0x28] sm:$0xff]   ;;  %v2481_v12 = vld [vmem:[#allocation5 + $0x20] sm:$0xff]   ;;  %vm2871_vm0 = vmmov 0   ;;  %vm1077_vm1 = vcmask 1043456  }
  0x9e   : > { %2838 = vsyncadd (%p3363_p7), [#allocation12], 4294959104  ;;  %655 = vadd.xlane.f32.xlu0 %v3167_v0  ;;  %v2475_v1 = vld [vmem:[#allocation5 + $0x38] sm:$0xff]   ;;  %v2477_v3 = vld [vmem:[#allocation5 + $0x30] sm:$0xff]   ;;  %2269 = vmatprep.subr.bf16.mxu0 %v2870_v4  ;;  %vm1058_vm2 = vcmask 64512   ;;  %s3364_s30 = sld [smem:[#allocation29_spill]] }
  0x9f   : > { %v2476_v2 = vld [vmem:[#allocation7 + $0x38] sm:$0xff]   ;;  %2289 = vmatprep.subr.bf16.mxu1 %v2870_v4  ;;  %v2478_v5 = vld [vmem:[#allocation7 + $0x30] sm:$0xff]   ;;  %2270 = vmatpush3.bf16.msra.mxu0 %v2475_v1  ;;  %v2480_v11 = vld [vmem:[#allocation7 + $0x28] sm:$0xff]   ;;  %s3365_s14 = sld [smem:[#allocation31_spill]]  ;;  %s2182_s17 = sshll.u32 %s2985_s0, 7 }
  0xa0   : > { %2290 = vmatpush3.bf16.msra.mxu1 %v2476_v2  ;;  %2271 = vmatprep.subr.bf16.mxu0 %v2870_v4  ;;  %v2482_v13 = vld [vmem:[#allocation7 + $0x20] sm:$0xff]   ;;  %v2483_v14 = vld [vmem:[#allocation5 + $0x18] sm:$0xff]   ;;  %v2485_v16 = vld [vmem:[#allocation5 + $0x10] sm:$0xff]   ;;  %s650_s1 = scalar_lea.vmem [#allocation14], %s2067_s21  ;;  %s3366_s22 = sld [smem:[#allocation32_spill]] }
  0xa1   : > { %2291 = vmatprep.subr.bf16.mxu1 %v2870_v4  ;;  %2285 = vmatprep.mubr.msk.bf16.mxu0 %vm2871_vm0, %v2870_v4  ;;  %v2484_v15 = vld [vmem:[#allocation7 + $0x18] sm:$0xff]   ;;  %v2486_v17 = vld [vmem:[#allocation7 + $0x10] sm:$0xff]   ;;  %v2487_v18 = vld [vmem:[#allocation5 + $0x8] sm:$0xff]   ;;  %s1928_s29 = sshll.u32 %s650_s1, 4  ;;  %s1915_s7 = scalar_lea.sflag [#allocation4], %s3145_s5  ;;  %s1929_s29 = int_to_ptr.vmem [resolvable:$true] %s1928_s29 }
  0xa2   : > { %2305 = vmatprep.mubr.msk.bf16.mxu1 %vm2871_vm0, %v2870_v4  ;;  %v2488_v19 = vld [vmem:[#allocation7 + $0x8] sm:$0xff]   ;;  %v2489_v20 = vld [vmem:[#allocation5] sm:$0xff]   ;;  %v2075_v26 = vld [vmem:[%s3304_s9] ss:$0 sm:$0xff]  ;;  %s2781_s13 = scalar_lea.vmem %s1929_s29, 128  ;;  %p3367_p10 = scmp.ne.s32.totalorder %s3352_s23, 0 }
  0xa3   : > { %2272 = vmatpush3.bf16.msra.mxu0 %v2477_v3  ;;  %v2490_v21 = vld [vmem:[#allocation7] sm:$0xff]   ;;  %v2076_v28 = vld [vmem:[%s3305_s10] ss:$0 sm:$0xff]  ;;  %v2491_v31 = vld [vmem:[#allocation8 + $0x38] sm:$0xff]   ;;  %p2782_p2 = scmp.ne.s32.totalorder %s1929_s29, %s2781_s13  ;;  %s2873_s15 = smov [#allocation14]  }
  0xa4   : > { %2292 = vmatpush3.bf16.msra.mxu1 %v2478_v5  ;;  %2273 = vmatprep.subr.bf16.mxu0 %v2870_v4  ;;  %v2492_v33 = vld [vmem:[#allocation8 + $0x30] sm:$0xff]   ;;  %v2493_v34 = vld [vmem:[#allocation8 + $0x28] sm:$0xff]   ;;  %v2494_v35 = vld [vmem:[#allocation8 + $0x20] sm:$0xff]   ;;  %s2785_s0 = sshll.u32 %s2873_s15, 4  ;;  %s2786_s0 = int_to_ptr.vmem [resolvable:$false] %s2785_s0 }
  0xa5   : > { %2293 = vmatprep.subr.bf16.mxu1 %v2870_v4  ;;  %v2495_v36 = vld [vmem:[#allocation8 + $0x18] sm:$0xff]   ;;  %v2496_v37 = vld [vmem:[#allocation8 + $0x10] sm:$0xff]   ;;  %v2497_v38 = vld [vmem:[#allocation8 + $0x8] sm:$0xff]   ;;  %p2783_p8 = pnand %p2782_p2, %p3367_p10  ;;  %s2787_s21 = scalar_lea.vmem %s2786_s0, 256 }
  0xa6   : > { %v2498_v39 = vld [vmem:[#allocation8] sm:$0xff]   ;;  %v2086_v40 = vld [vmem:[%s3299_s4] ss:$0 sm:$0xff]  ;;  %s1926_s3 = scalar_lea.hbm %s3366_s22, %s2182_s17  ;;  %p2788_p13 = scmp.lt.s32.totalorder %s1929_s29, %s2786_s0 }
  0xa7   : > { %2274 = vmatpush3.bf16.msra.mxu0 %v2479_v10  ;;  %v2077_v46 = vld [vmem:[%s3297_s2] ss:$0 sm:$0xff]  ;;  %p2784_p11 = pneg %p2783_p8  ;;  %p2789_p5 = scmp.lt.s32.totalorder %s2787_s21, %s2781_s13 }
  0xa8   : > { %2294 = vmatpush3.bf16.msra.mxu1 %v2480_v11  ;;  %2275 = vmatprep.subr.bf16.mxu0 %v2870_v4  ;;  %v2095_v54 = vld [vmem:[%s3301_s6] ss:$0 sm:$0xff]  ;;  %v2499_v11 = vld [vmem:[#allocation10 + $0x38] sm:$0xff]  }
  0xa9   : > { %2295 = vmatprep.subr.bf16.mxu1 %v2870_v4  ;;  %p2790_p9 = por %p2789_p5, %p2788_p13 }
  0xab   : > { %2276 = vmatpush3.bf16.msra.mxu0 %v2481_v12  ;;  %v2500_v12 = vld [vmem:[#allocation10 + $0x30] sm:$0xff]   ;;  %p2791_p1 = pnand %p2790_p9, %p2784_p11 }
  0xac   : > { %2296 = vmatpush3.bf16.msra.mxu1 %v2482_v13  ;;  %2277 = vmatprep.subr.bf16.mxu0 %v2870_v4  ;;  %v2501_v13 = vld [vmem:[#allocation10 + $0x28] sm:$0xff]  }
  0xad   : > { %2297 = vmatprep.subr.bf16.mxu1 %v2870_v4 }
  0xaf   : > { %2278 = vmatpush3.bf16.msra.mxu0 %v2483_v14  ;;  %v2502_v14 = vld [vmem:[#allocation10 + $0x20] sm:$0xff]  }
  0xb0   : > { %2298 = vmatpush3.bf16.msra.mxu1 %v2484_v15  ;;  %2279 = vmatprep.subr.bf16.mxu0 %v2870_v4  ;;  %v2503_v15 = vld [vmem:[#allocation10 + $0x18] sm:$0xff]  }
  0xb1   : > { %2299 = vmatprep.subr.bf16.mxu1 %v2870_v4 }
  0xb3   : > { %2280 = vmatpush3.bf16.msra.mxu0 %v2485_v16  ;;  %v2504_v16 = vld [vmem:[#allocation10 + $0x10] sm:$0xff]  }
  0xb4   : > { %2300 = vmatpush3.bf16.msra.mxu1 %v2486_v17  ;;  %2281 = vmatprep.subr.bf16.mxu0 %v2870_v4  ;;  %v2505_v17 = vld [vmem:[#allocation10 + $0x8] sm:$0xff]  }
  0xb5   : > { %2301 = vmatprep.subr.bf16.mxu1 %v2870_v4 }
  0xb7   : > { %2282 = vmatpush3.bf16.msra.mxu0 %v2487_v18  ;;  %v2506_v18 = vld [vmem:[#allocation10] sm:$0xff]  }
  0xb8   : > { %2302 = vmatpush3.bf16.msra.mxu1 %v2488_v19  ;;  %2283 = vmatprep.subr.bf16.mxu0 %v2870_v4 }
  0xb9   : > { %2303 = vmatprep.subr.bf16.mxu1 %v2870_v4 }
  0xbb   : > { %2284 = vmatpush3.bf16.msra.mxu0 %v2489_v20 }
  0xbc   : > { %2304 = vmatpush3.bf16.msra.mxu1 %v2490_v21  ;;  %2309 = vmatprep.subr.bf16.mxu0 %v2870_v4 }
  0xbd   : > { %2335 = vmatprep.subr.bf16.mxu1 %v2870_v4 }
 0x127   : > { %v656_v6 = vpop.xlane.xlu0 %655 }
 0x128   : > { %v658_v7 = vmul.f32 0.0078125, %v656_v6 }
 0x12a   : > { %v659_v8 = vsub.f32 %v3167_v0, %v658_v7 }
 0x12c   : > { %v660_v9 = vmul.f32 %v659_v8, %v659_v8 }
 0x12e   : > { %661 = vadd.xlane.f32.xlu0 %v660_v9 }
 0x1b7   : > { %v662_v22 = vpop.xlane.xlu0 %661 }
 0x1b8   : > { %v663_v23 = vmul.f32 0.0078125, %v662_v22 }
 0x1ba   : > { %v664_v24 = vadd.f32 1e-05, %v663_v23 }
 0x1bc   : > { %2587 = vrsqrt.f32 %v664_v24 }
 0x1c9   : > { %v2588_v25 = vpop.eup %2587 }
 0x1ca   : > { %v666_v27 = vmul.f32 %v2588_v25, %v659_v8 }
 0x1cc   : > { %v673_v29 = vmul.f32 %v2075_v26, %v666_v27 }
 0x1ce   : > { %v680_v30 = vadd.f32 %v2076_v28, %v673_v29 }
 0x1d0   : > { %v681_v32 = vpack.c.bf16 %v680_v30, %v680_v30 }
 0x1d2   : > { %2286 = vmatmul.mubr.bf16.vlgmr.msra.gmra.mxu0 %v681_v32  ;;  %2306 = vmatmul.mubr.bf16.vlgmr.msra.gmra.mxu1 %v681_v32 }
 0x1d3   : > { %2310 = vmatpush3.bf16.msra.mxu0 %v2491_v31  ;;  %2325 = vmatprep.mubr.msk.bf16.mxu0 %vm2871_vm0, %v2870_v4 }
 0x1d4   : > { %2311 = vmatprep.subr.bf16.mxu0 %v2870_v4  ;;  %2337 = vmatprep.mubr.msk.bf16.mxu1 %vm2871_vm0, %v2870_v4 }
 0x1d7   : > { %2312 = vmatpush3.bf16.msra.mxu0 %v2492_v33 }
 0x1d8   : > { %2313 = vmatprep.subr.bf16.mxu0 %v2870_v4 }
 0x1db   : > { %2314 = vmatpush3.bf16.msra.mxu0 %v2493_v34 }
 0x1dc   : > { %2315 = vmatprep.subr.bf16.mxu0 %v2870_v4 }
 0x1df   : > { %2316 = vmatpush3.bf16.msra.mxu0 %v2494_v35 }
 0x1e0   : > { %2317 = vmatprep.subr.bf16.mxu0 %v2870_v4 }
 0x1e3   : > { %2318 = vmatpush3.bf16.msra.mxu0 %v2495_v36 }
 0x1e4   : > { %2319 = vmatprep.subr.bf16.mxu0 %v2870_v4 }
 0x1e7   : > { %2320 = vmatpush3.bf16.msra.mxu0 %v2496_v37 }
 0x1e8   : > { %2321 = vmatprep.subr.bf16.mxu0 %v2870_v4 }
 0x1eb   : > { %2322 = vmatpush3.bf16.msra.mxu0 %v2497_v38 }
 0x1ec   : > { %2323 = vmatprep.subr.bf16.mxu0 %v2870_v4 }
 0x1ef   : > { %2324 = vmatpush3.bf16.msra.mxu0 %v2498_v39  ;;  %v2507_v39 = vld [vmem:[#allocation11 + $0xe0] ss:$16 sps:$4 sm:$0xff]  }
 0x1f0   : > { %2329 = vmatprep.subr.bf16.mxu0 %v2870_v4 }
 0x1f2   : > { %2326 = vmatmul.mubr.bf16.vlgmr.msra.gmra.mxu0 %v681_v32 }
 0x1f3   : > { %2331 = vmatprep.mubr.msk.bf16.mxu0 %vm2871_vm0, %v2870_v4 }
 0x292   : > { %v787_v41 = vpop.f32.mrf.mxu0  ;;  %v898_v42 = vpop.f32.mrf.mxu1 }
 0x293   : > { %v899_v43 = vadd.f32 %v2086_v40, %v898_v42  ;;  %v788_v50 = vadd.f32 %v2077_v46, %v787_v41  ;;  %v2509_v40 = vld [vmem:[#allocation11 + $0xe4] ss:$16 sps:$4 sm:$0xff]   ;;  %v2510_v41 = vld [vmem:[#allocation11 + $0xe8] ss:$16 sps:$4 sm:$0xff]   ;;  %v2512_v42 = vld [vmem:[#allocation11 + $0xec] ss:$16 sps:$4 sm:$0xff]  }
 0x294   : > { %v2287_v44 = vpop.f32.mrf.mxu0  ;;  %v2307_v45 = vpop.f32.mrf.mxu1  ;;  %v2516_v46 = vld [vmem:[#allocation11 + $0xc8] ss:$16 sps:$4 sm:$0xff]  }
 0x295   : > { %v1016_v47 = vpack.c.bf16 %v899_v43, %v899_v43  ;;  %v1015_v53 = vpack.c.bf16 %v788_v50, %v788_v50  ;;  %v2515_v43 = vld [vmem:[#allocation11 + $0xc4] ss:$16 sps:$4 sm:$0xff]   ;;  %v2518_v44 = vld [vmem:[#allocation11 + $0xcc] ss:$16 sps:$4 sm:$0xff]   ;;  %v2513_v45 = vld [vmem:[#allocation11 + $0xc0] ss:$16 sps:$4 sm:$0xff]  }
 0x296   : > { %v790_v48 = vpop.f32.mrf.mxu0  ;;  %v901_v49 = vpop.f32.mrf.mxu1  ;;  %v2521_v50 = vld [vmem:[#allocation11 + $0xa4] ss:$16 sps:$4 sm:$0xff]  }
 0x297   : > { %2330 = vmatpush3.bf16.xpose.msra.mxu0 %v1016_v47 }
 0x298   : > { %v2288_v51 = vpop.f32.mrf.mxu0  ;;  %v2308_v52 = vpop.f32.mrf.mxu1  ;;  %1479 = vmatprep.subr.bf16.mxu0 %v2509_v40  ;;  %v2572_v40 = vld [vmem:[#allocation13 + $0xd8] sm:$0xff]  }
 0x299   : > { %v2524_v51 = vld [vmem:[#allocation11 + $0xac] ss:$16 sps:$4 sm:$0xff]   ;;  %v2519_v52 = vld [vmem:[#allocation11 + $0xa0] ss:$16 sps:$4 sm:$0xff]  }
 0x29e   : > { %2332 = vmatmul.mubr.bf16.vlgmr.msra.gmra.mxu0 %v1015_v53  ;;  %v2522_v53 = vld [vmem:[#allocation11 + $0xa8] ss:$16 sps:$4 sm:$0xff]  }
 0x29f   : > { %1480 = vmatpush1.bf16.msra.mxu0 %v2507_v39  ;;  %v2571_v39 = vld [vmem:[#allocation13 + $0x58] sm:$0xff]  }
 0x2a0   : > { %1481 = vmatprep.subr.bf16.mxu0 %v2515_v43  ;;  %v2575_v43 = vld [vmem:[#allocation13 + $0x50] sm:$0xff]  }
 0x2a3   : > { %1482 = vmatpush1.bf16.msra.mxu0 %v2513_v45  ;;  %v2577_v45 = vld [vmem:[#allocation13 + $0x10] sm:$0xff]  }
 0x2a4   : > { %1483 = vmatprep.subr.bf16.mxu0 %v2521_v50  ;;  %v2583_v50 = vld [vmem:[#allocation13 + $0x40] sm:$0xff]  }
 0x2a7   : > { %1484 = vmatpush1.bf16.msra.mxu0 %v2519_v52  ;;  %v2585_v52 = vld [vmem:[#allocation13] sm:$0xff]  }
 0x2b2   : > { %v1009_v55 = vpop.f32.mrf.mxu0 }
 0x2b3   : > { %v1010_v56 = vadd.f32 %v2095_v54, %v1009_v55  ;;  %v2525_v54 = vld [vmem:[#allocation11 + $0x80] ss:$16 sps:$4 sm:$0xff]   ;;  %v2527_v55 = vld [vmem:[#allocation11 + $0x84] ss:$16 sps:$4 sm:$0xff]  }
 0x2b4   : > { %v2327_v57 = vpop.f32.mrf.mxu0  ;;  %1485 = vmatprep.subr.bf16.mxu0 %v2527_v55 }
 0x2b5   : > { %v1017_v58 = vpack.c.bf16 %v1010_v56, %v1010_v56  ;;  %v2528_v56 = vld [vmem:[#allocation11 + $0x88] ss:$16 sps:$4 sm:$0xff]   ;;  %v2530_v57 = vld [vmem:[#allocation11 + $0x8c] ss:$16 sps:$4 sm:$0xff]   ;;  %1486 = vmatpush1.bf16.msra.mxu0 %v2525_v54  ;;  %v1299_v54 = vlaneseq }
 0x2b6   : > { %v1012_v59 = vpop.f32.mrf.mxu0 }
 0x2b7   : > { %v1079_v60 = vsel %vm1077_vm1, %v1017_v58, 0  ;;  %v2533_v58 = vld [vmem:[#allocation11 + $0x64] ss:$16 sps:$4 sm:$0xff]   ;;  %v2536_v59 = vld [vmem:[#allocation11 + $0x6c] ss:$16 sps:$4 sm:$0xff]   ;;  %v1300_v55 = vshrl.u32 %v1299_v54, 7 }
 0x2b8   : > { %v2328_v61 = vpop.f32.mrf.mxu0  ;;  %2336 = vmatpush3.bf16.msra.mxu1 %v1079_v60  ;;  %v2531_v60 = vld [vmem:[#allocation11 + $0x60] ss:$16 sps:$4 sm:$0xff]   ;;  %1487 = vmatprep.subr.bf16.mxu0 %v2533_v58 }
 0x2b9   : > { %2341 = vmatprep.subr.bf16.mxu1 %v2870_v4  ;;  %v2534_v61 = vld [vmem:[#allocation11 + $0x68] ss:$16 sps:$4 sm:$0xff]   ;;  %1488 = vmatpush1.bf16.msra.mxu0 %v2531_v60  ;;  %v1297_v58 = vld [vmem:[%s3364_s30] sm:$0xf]  ;;  %v1313_v60 = vsub.s32 3, %v1300_v55 }
 0x35e   : > { %v1052_v62 = vpop.f32.mrf.mxu0 }
 0x35f   : > { %v1059_v63 = vsel %vm1058_vm2, %v1052_v62, -inf }
 0x360   : > { %1060 = vmax.xlane.f32.xlu1 %v1059_v63  ;;  %v2333_v1 = vpop.f32.mrf.mxu0  ;;  %v2542_v63 = vld [vmem:[#allocation11 + $0x4c] ss:$16 sps:$4 sm:$0xff]  }
 0x361   : > { %v2537_v1 = vld [vmem:[#allocation11 + $0x40] ss:$16 sps:$4 sm:$0xff]  }
 0x362   : > { %v1055_v2 = vpop.f32.mrf.mxu0 }
 0x363   : > { %v2872_v2 = vmov 0  }
 0x364   : > { %v2334_v3 = vpop.f32.mrf.mxu0  ;;  %1511 = vmatprep.mubr.bf16.mxu0 %v2872_v2 }
 0x365   : > { %v2540_v3 = vld [vmem:[#allocation11 + $0x48] ss:$16 sps:$4 sm:$0xff]  }
 0x3e9   : > { %v1061_v5 = vpop.xlane.xlu1 %1060 }
 0x3ea   : > { %v1065_v6 = vsub.f32 %v1052_v62, %v1061_v5  ;;  %v1062_v19 = vsub.f32 -inf, %v1061_v5  ;;  %v2539_v62 = vld [vmem:[#allocation11 + $0x44] ss:$16 sps:$4 sm:$0xff]  }
 0x3eb   : > { %1489 = vmatprep.subr.bf16.mxu0 %v2539_v62  ;;  %v2545_v5 = vld [vmem:[#allocation11 + $0x24] ss:$16 sps:$4 sm:$0xff]  }
 0x3ec   : > { %v1066_v7 = vmul.f32 1.442695, %v1065_v6  ;;  %v1063_v20 = vmul.f32 1.442695, %v1062_v19  ;;  %v2548_v6 = vld [vmem:[#allocation11 + $0x2c] ss:$16 sps:$4 sm:$0xff]   ;;  %1490 = vmatpush1.bf16.msra.mxu0 %v2537_v1  ;;  %v1314_v1 = vrot.slane %v1297_v58, %v1313_v60 }
 0x3ed   : > { %1491 = vmatprep.subr.bf16.mxu0 %v2545_v5  ;;  %v2114_v19 = vld [vmem:[%s3306_s11] ss:$0 sm:$0xff] }
 0x3ee   : > { %2589 = vpow2.f32 %v1066_v7  ;;  %v2543_v7 = vld [vmem:[#allocation11 + $0x20] ss:$16 sps:$4 sm:$0xff]  }
 0x3ef   : > { %2591 = vpow2.f32 %v1063_v20 }
 0x3f0   : > { %1492 = vmatpush1.bf16.msra.mxu0 %v2543_v7 }
 0x3fb   : > { %v2590_v8 = vpop.eup %2589 }
 0x3fc   : > { %v1069_v9 = vsel %vm1058_vm2, %v2590_v8, 0.0  ;;  %v1073_v10 = vpack.c.bf16 %v2590_v8, %v2590_v8  ;;  %v2592_v21 = vpop.eup %2591  ;;  %v2546_v8 = vld [vmem:[#allocation11 + $0x28] ss:$16 sps:$4 sm:$0xff]  }
 0x3fd   : > { %1070 = vadd.xlane.f32.xlu1 %v1069_v9  ;;  %v1068_v23 = vmul.f32 0.0, %v2592_v21  ;;  %v2551_v9 = vld [vmem:[#allocation11 + $0x4] ss:$16 sps:$4 sm:$0xff]   ;;  %v2115_v21 = vld [vmem:[%s3307_s12] ss:$0 sm:$0xff] }
 0x3fe   : > { %2338 = vmatmul.mubr.msk.bf16.vlgmr.msra.gmra.mxu1 %vm1058_vm2, %v1073_v10  ;;  %v2554_v10 = vld [vmem:[#allocation11 + $0xc] ss:$16 sps:$4 sm:$0xff]   ;;  %1493 = vmatprep.subr.bf16.mxu0 %v2551_v9 }
 0x3ff   : > { %2357 = vmatprep.mubr.msk.bf16.mxu1 %vm2871_vm0, %v2870_v4  ;;  %2342 = vmatpush3.bf16.msra.mxu1 %v2499_v11  ;;  %v2549_v11 = vld [vmem:[#allocation11] ss:$16 sps:$4 sm:$0xff]  }
 0x400   : > { %2343 = vmatprep.subr.bf16.mxu1 %v2870_v4  ;;  %1494 = vmatpush1.bf16.msra.mxu0 %v2549_v11 }
 0x403   : > { %2344 = vmatpush3.bf16.msra.mxu1 %v2500_v12  ;;  %v2552_v12 = vld [vmem:[#allocation11 + $0x8] ss:$16 sps:$4 sm:$0xff]  }
 0x404   : > { %2345 = vmatprep.subr.bf16.mxu1 %v2870_v4 }
 0x407   : > { %2346 = vmatpush3.bf16.msra.mxu1 %v2501_v13  ;;  %v2555_v13 = vld [vmem:[#allocation13 + $0x78] sm:$0xff]  }
 0x408   : > { %2347 = vmatprep.subr.bf16.mxu1 %v2870_v4  ;;  %2225 = vmatprep.subr.bf16.mxu0 %v2555_v13 }
 0x40b   : > { %2348 = vmatpush3.bf16.msra.mxu1 %v2502_v14  ;;  %v2556_v14 = vld [vmem:[#allocation13 + $0xf8] sm:$0xff]  }
 0x40c   : > { %2349 = vmatprep.subr.bf16.mxu1 %v2870_v4 }
 0x40f   : > { %2350 = vmatpush3.bf16.msra.mxu1 %v2503_v15 }
 0x410   : > { %2351 = vmatprep.subr.bf16.mxu1 %v2870_v4 }
 0x413   : > { %2352 = vmatpush3.bf16.msra.mxu1 %v2504_v16 }
 0x414   : > { %2353 = vmatprep.subr.bf16.mxu1 %v2870_v4 }
 0x417   : > { %2354 = vmatpush3.bf16.msra.mxu1 %v2505_v17 }
 0x418   : > { %2355 = vmatprep.subr.bf16.mxu1 %v2870_v4  ;;  %v2105_v4 = vld [vmem:[%s3303_s8] ss:$0 sm:$0xff] }
 0x41b   : > { %2356 = vmatpush3.bf16.msra.mxu1 %v2506_v18 }
 0x41c   : > { %1520 = vmatprep.subr.bf16.mxu1 %v2512_v42  ;;  %v2574_v42 = vld [vmem:[#allocation13 + $0x98] sm:$0xff]  }
 0x486   : > { %v1071_v22 = vpop.xlane.xlu1 %1070 }
 0x487   : > { %v1072_v24 = vadd.f32 %v1071_v22, %v1068_v23 }
 0x489   : > { %2593 = vrcp.f32 %v1072_v24  ;;  %v2557_v24 = vld [vmem:[#allocation13 + $0x38] sm:$0xff]  }
 0x496   : > { %v2594_v27 = vpop.eup %2593 }
 0x4be   : > { %v1115_v25 = vpop.f32.mrf.mxu1 }
 0x4bf   : > { %v1121_v26 = vadd.f32 %v1115_v25, %v1068_v23  ;;  %v2558_v25 = vld [vmem:[#allocation13 + $0xb8] sm:$0xff]  }
 0x4c0   : > { %v2339_v28 = vpop.f32.mrf.mxu1 }
 0x4c1   : > { %v1123_v29 = vmul.f32 %v2594_v27, %v1121_v26  ;;  %v2559_v27 = vld [vmem:[#allocation13 + $0x70] sm:$0xff]  }
 0x4c2   : > { %v1118_v30 = vpop.f32.mrf.mxu1  ;;  %v2560_v28 = vld [vmem:[#allocation13 + $0xf0] sm:$0xff]  }
 0x4c3   : > { %v1124_v31 = vpack.c.bf16 %v1123_v29, %v1123_v29  ;;  %v2561_v29 = vld [vmem:[#allocation13 + $0x30] sm:$0xff]  }
 0x4c4   : > { %v2340_v32 = vpop.f32.mrf.mxu1  ;;  %v2562_v30 = vld [vmem:[#allocation13 + $0xb0] sm:$0xff]  }
 0x4c5   : > { %2358 = vmatmul.mubr.bf16.vlgmr.msra.gmra.mxu1 %v1124_v31  ;;  %v2563_v31 = vld [vmem:[#allocation13 + $0x68] sm:$0xff]  }
 0x4c6   : > { %1521 = vmatpush1.bf16.msra.mxu1 %v2510_v41  ;;  %1552 = vmatprep.mubr.bf16.mxu1 %v2872_v2  ;;  %v2564_v32 = vld [vmem:[#allocation13 + $0xe8] sm:$0xff]   ;;  %v2573_v41 = vld [vmem:[#allocation13 + $0x18] sm:$0xff]  }
 0x4c7   : > { %1522 = vmatprep.subr.bf16.mxu1 %v2518_v44  ;;  %v2576_v44 = vld [vmem:[#allocation13 + $0xd0] sm:$0xff]  }
 0x4ca   : > { %1523 = vmatpush1.bf16.msra.mxu1 %v2516_v46  ;;  %v2578_v46 = vld [vmem:[#allocation13 + $0x90] sm:$0xff]  }
 0x4cb   : > { %1524 = vmatprep.subr.bf16.mxu1 %v2524_v51  ;;  %v2584_v51 = vld [vmem:[#allocation13 + $0xc0] sm:$0xff]  }
 0x4ce   : > { %1525 = vmatpush1.bf16.msra.mxu1 %v2522_v53  ;;  %v2586_v53 = vld [vmem:[#allocation13 + $0x80] sm:$0xff]  }
 0x4cf   : > { %1526 = vmatprep.subr.bf16.mxu1 %v2530_v57  ;;  %v1309_v57 = vsub.s32 2, %v1300_v55 }
 0x4d1   : > { %v1310_v62 = vrot.slane %v1297_v58, %v1309_v57 }
 0x4d2   : > { %1527 = vmatpush1.bf16.msra.mxu1 %v2528_v56  ;;  %v1301_v56 = vsub.s32 0, %v1300_v55 }
 0x4d3   : > { %1528 = vmatprep.subr.bf16.mxu1 %v2536_v59  ;;  %v1305_v59 = vsub.s32 1, %v1300_v55 }
 0x4d6   : > { %1529 = vmatpush1.bf16.msra.mxu1 %v2534_v61  ;;  %v1302_v61 = vrot.slane %v1297_v58, %v1301_v56 }
 0x4d7   : > { %1530 = vmatprep.subr.bf16.mxu1 %v2542_v63  ;;  %v1306_v63 = vrot.slane %v1297_v58, %v1305_v59 }
 0x4da   : > { %1531 = vmatpush1.bf16.msra.mxu1 %v2540_v3 }
 0x4db   : > { %1532 = vmatprep.subr.bf16.mxu1 %v2548_v6 }
 0x4de   : > { %1533 = vmatpush1.bf16.msra.mxu1 %v2546_v8 }
 0x4df   : > { %1534 = vmatprep.subr.bf16.mxu1 %v2554_v10 }
 0x4e2   : > { %1535 = vmatpush1.bf16.msra.mxu1 %v2552_v12 }
 0x4e3   : > { %2247 = vmatprep.subr.bf16.mxu1 %v2556_v14 }
 0x585   : > { %v1230_v33 = vpop.f32.mrf.mxu1 }
 0x586   : > { %v1231_v34 = vadd.f32 %v2105_v4, %v1230_v33  ;;  %v2565_v4 = vld [vmem:[#allocation13 + $0x28] sm:$0xff]  }
 0x587   : > { %v2359_v35 = vpop.f32.mrf.mxu1  ;;  %v2566_v33 = vld [vmem:[#allocation13 + $0xa8] sm:$0xff]  }
 0x588   : > { %v3236_v36 = vadd.f32 %v1231_v34, %v3167_v0  ;;  %v2567_v34 = vld [vmem:[#allocation13 + $0x60] sm:$0xff]  }
 0x589   : > { %v1233_v37 = vpop.f32.mrf.mxu1  ;;  %v2568_v35 = vld [vmem:[#allocation13 + $0xe0] sm:$0xff]  }
 0x58a   : > { %1239 = vadd.xlane.f32.xlu0 %v3236_v36  ;;  %v2569_v37 = vld [vmem:[#allocation13 + $0x20] sm:$0xff]  }
 0x58b   : > { %v2360_v38 = vpop.f32.mrf.mxu1 }
 0x58c   : > { %v2570_v38 = vld [vmem:[#allocation13 + $0xa0] sm:$0xff]  }
 0x613   : > { %v1240_v0 = vpop.xlane.xlu0 %1239 }
 0x614   : > { %v1241_v47 = vmul.f32 0.0078125, %v1240_v0  ;;  %v2579_v0 = vld [vmem:[#allocation13 + $0x48] sm:$0xff]  }
 0x616   : > { %v3240_v48 = vsub.f32 %v3236_v36, %v1241_v47  ;;  %v2580_v47 = vld [vmem:[#allocation13 + $0xc8] sm:$0xff]  }
 0x618   : > { %v1243_v49 = vmul.f32 %v3240_v48, %v3240_v48 }
 0x61a   : > { %1244 = vadd.xlane.f32.xlu1 %v1243_v49  ;;  %v2582_v49 = vld [vmem:[#allocation13 + $0x88] sm:$0xff]  }
 0x6a3   : > { %v1245_v15 = vpop.xlane.xlu1 %1244 }
 0x6a4   : > { %v1246_v16 = vmul.f32 0.0078125, %v1245_v15 }
 0x6a6   : > { %v1247_v17 = vadd.f32 1e-05, %v1246_v16 }
 0x6a8   : > { %2595 = vrsqrt.f32 %v1247_v17 }
 0x6b5   : > { %v2596_v18 = vpop.eup %2595 }
 0x6b6   : > { %v1249_v20 = vmul.f32 %v2596_v18, %v3240_v48  ;;  %v2581_v48 = vld [vmem:[#allocation13 + $0x8] sm:$0xff]  }
 0x6b8   : > { %v1256_v22 = vmul.f32 %v2114_v19, %v1249_v20 }
 0x6ba   : > { %v1263_v23 = vadd.f32 %v2115_v21, %v1256_v22 }
 0x6bc   : > { %v1264_v26 = vpack.c.bf16 %v1263_v23, %v1263_v23 }
 0x6be   : > { %1512 = vmatmul.mubr.bf16.vlgmr.msra.gmra.mxu0 %v1264_v26  ;;  %1553 = vmatmul.mubr.bf16.vlgmr.msra.gmra.mxu1 %v1264_v26 }
 0x6bf   : > { %2226 = vmatpush3.bf16.msra.mxu0 %v2557_v24  ;;  %2248 = vmatpush3.bf16.msra.mxu1 %v2558_v25  ;;  %v2148_v25 = vld [vmem:[%s3365_s14] ss:$0 sm:$0xff] }
 0x6c0   : > { %2227 = vmatprep.subr.bf16.mxu0 %v2559_v27  ;;  %2249 = vmatprep.subr.bf16.mxu1 %v2560_v28 }
 0x6c3   : > { %2228 = vmatpush3.bf16.msra.mxu0 %v2561_v29  ;;  %2250 = vmatpush3.bf16.msra.mxu1 %v2562_v30 }
 0x6c4   : > { %2229 = vmatprep.subr.bf16.mxu0 %v2563_v31  ;;  %2251 = vmatprep.subr.bf16.mxu1 %v2564_v32 }
 0x6c7   : > { %2230 = vmatpush3.bf16.msra.mxu0 %v2565_v4  ;;  %2252 = vmatpush3.bf16.msra.mxu1 %v2566_v33 }
 0x6c8   : > { %2231 = vmatprep.subr.bf16.mxu0 %v2567_v34  ;;  %2253 = vmatprep.subr.bf16.mxu1 %v2568_v35 }
 0x6cb   : > { %2232 = vmatpush3.bf16.msra.mxu0 %v2569_v37  ;;  %2254 = vmatpush3.bf16.msra.mxu1 %v2570_v38 }
 0x6cc   : > { %2233 = vmatprep.subr.bf16.mxu0 %v2571_v39  ;;  %2255 = vmatprep.subr.bf16.mxu1 %v2572_v40 }
 0x6cf   : > { %2234 = vmatpush3.bf16.msra.mxu0 %v2573_v41  ;;  %2256 = vmatpush3.bf16.msra.mxu1 %v2574_v42 }
 0x6d0   : > { %2235 = vmatprep.subr.bf16.mxu0 %v2575_v43  ;;  %2257 = vmatprep.subr.bf16.mxu1 %v2576_v44 }
 0x6d3   : > { %2236 = vmatpush3.bf16.msra.mxu0 %v2577_v45  ;;  %2258 = vmatpush3.bf16.msra.mxu1 %v2578_v46 }
 0x6d4   : > { %2237 = vmatprep.subr.bf16.mxu0 %v2579_v0  ;;  %2259 = vmatprep.subr.bf16.mxu1 %v2580_v47 }
 0x6d7   : > { %2238 = vmatpush3.bf16.msra.mxu0 %v2581_v48  ;;  %2260 = vmatpush3.bf16.msra.mxu1 %v2582_v49 }
 0x6d8   : > { %2239 = vmatprep.subr.bf16.mxu0 %v2583_v50  ;;  %2261 = vmatprep.subr.bf16.mxu1 %v2584_v51 }
 0x6db   : > { %2240 = vmatpush3.bf16.msra.mxu0 %v2585_v52  ;;  %2262 = vmatpush3.bf16.msra.mxu1 %v2586_v53 }
 0x77e   : > { %v1513_v2 = vpop.f32.mrf.mxu0  ;;  %v1554_v3 = vpop.f32.mrf.mxu1 }
 0x77f   : > { %v1514_v5 = vadd.f32 %v1513_v2, %v1302_v61  ;;  %v1555_v6 = vadd.f32 %v1554_v3, %v1310_v62 }
 0x780   : > { %v1515_v7 = vpop.f32.mrf.mxu0  ;;  %v1556_v8 = vpop.f32.mrf.mxu1 }
 0x781   : > { %v1516_v9 = vadd.f32 %v1515_v7, %v1306_v63  ;;  %v1557_v10 = vadd.f32 %v1556_v8, %v1314_v1  ;;  %v1561_v11 = vmax.f32 %v1514_v5, 0.0  ;;  %v1563_v12 = vmax.f32 %v1555_v6, 0.0 }
 0x782   : > { %v1517_v13 = vpop.f32.mrf.mxu0  ;;  %v1558_v14 = vpop.f32.mrf.mxu1 }
 0x783   : > { %v1562_v15 = vmax.f32 %v1516_v9, 0.0  ;;  %v1564_v16 = vmax.f32 %v1557_v10, 0.0  ;;  %v1565_v21 = vpack.c.bf16 %v1561_v11, %v1561_v11  ;;  %v1567_v22 = vpack.c.bf16 %v1563_v12, %v1563_v12 }
 0x784   : > { %v1518_v17 = vpop.f32.mrf.mxu0  ;;  %v1559_v18 = vpop.f32.mrf.mxu1 }
 0x785   : > { %v1566_v19 = vpack.c.bf16 %v1562_v15, %v1562_v15  ;;  %v1568_v20 = vpack.c.bf16 %v1564_v16, %v1564_v16 }
 0x787   : > { %1864 = vmatprep.mubr.bf16.mxu0 %v1566_v19  ;;  %1904 = vmatprep.mubr.bf16.mxu1 %v1568_v20 }
 0x788   : > { %1865 = vmatmul.mubr.bf16.vlgmr.msra.gmra.mxu0 %v1565_v21  ;;  %1905 = vmatmul.mubr.bf16.vlgmr.msra.gmra.mxu1 %v1567_v22 }
 0x848   : > { %v2241_v23 = vpop.f32.mrf.mxu0  ;;  %v2263_v24 = vpop.f32.mrf.mxu1 }
 0x84a   : > { %v2242_v26 = vpop.f32.mrf.mxu0  ;;  %v2264_v27 = vpop.f32.mrf.mxu1 }
 0x84b   : > { %v2243_v28 = vadd.f32 %v2242_v26, %v2241_v23  ;;  %v2265_v32 = vadd.f32 %v2264_v27, %v2263_v24 }
 0x84c   : > { %v2244_v29 = vpop.f32.mrf.mxu0  ;;  %v2266_v30 = vpop.f32.mrf.mxu1 }
 0x84d   : > { %v1867_v31 = vadd.f32 %v2243_v28, %v2148_v25 }
 0x84e   : > { %v2245_v4 = vpop.f32.mrf.mxu0  ;;  %v2267_v33 = vpop.f32.mrf.mxu1 }
 0x84f   : > { %v1907_v34 = vadd.f32 %v2265_v32, %v1867_v31 }
 0x851   : > { %v1912_v35 = vadd.f32 %v1907_v34, %v3236_v36 }
 0x853   : > { %1913 = vst [vmem:[%s650_s1] sm:$0xff] %v1912_v35 }
 0x854   : > { %2794 = shalt.err (!%p2791_p1)
}
 0x855   : > { %s2795_s30 = scalar_lea.hbm %s1926_s3, 128  ;;  %s2799_s18 = scalar_lea.hbm %s3366_s22, 256 }
 0x856   : > { %p2796_p3 = scmp.ne.s32.totalorder %s1926_s3, %s2795_s30  ;;  %p2800_p12 = scmp.lt.s32.totalorder %s1926_s3, %s3366_s22 }
 0x857   : > { %p2801_p0 = scmp.lt.s32.totalorder %s2799_s18, %s2795_s30 }
 0x858   : > { %p2797_p4 = pnand %p2796_p3, %p3367_p10 }
 0x859   : > { %p2802_p7 = por %p2801_p0, %p2800_p12 }
 0x85a   : > { %p2798_p6 = pneg %p2797_p4 }
 0x85c   : > { %p2803_p2 = pnand %p2802_p7, %p2798_p6 }
 0x85e   : > { %2806 = shalt.err (!%p2803_p2)
}
 0x85f   : > { %2387 = dma.vmem_to_hbm [thread:$0]  (%p3367_p10), %s1929_s29, 128, %s1926_s3, %s1915_s7  }
 0x860 PF: > { %s1940_s1 = sand.u32 1, %s2845_s24   ;;  %p3368_p8 = scmp.ne.s32.totalorder %s3353_s19, 0 }
 0x861   : > { %p3369_p11 = scmp.ge.s32.totalorder %s2857_s27, 2  ;;  %s1941_s20 = scalar_lea.sflag [#allocation4], %s1940_s1 }
 0x863   : > { %p2413_p13 = pnand %p3369_p11, %p3368_p8 }
 0x865   : > { %p2414_p5 = pneg %p2413_p13 }
 0x867   : > { %2840 = dma.done.wait (%p2414_p5), %s1941_s20, 128  }
 0x868   : > { %2842 = vsyncadd (%p2414_p5), %s1941_s20, 4294967168  ;;  %s3370_s27 = sld [smem:[#allocation21_spill]]  ;;  %s3373_s24 = smov %s2849_s25 }
 0x869   : > { %s3371_s26 = sld [smem:[#allocation20_spill]] }
 0x86a   : > { %s3372_s13 = sld [smem:[#allocation22_spill]] }
 0x86e   : > { %p33_p9 = scmp.ge.s32.totalorder %s3370_s27, 4  }
 0x86f   : > { %s3374_s25 = smov %s3371_s26 }
 0x870   : > { %s3375_s26 = smov %s3372_s13  ;;  %35 = sbr.rel (!%p33_p9) target bundleno = 19 (0x13), region = 157 }
 0x875   :  { %1946 = vsyncpa [#allocation3], 1 }
 0x876   :  { %1948 = vsyncpa [#allocation3 + $0x1], 1 }
 0x877   :  { %1949 = vsyncpa [#allocation6], 1 }
 0x878   :  { %1950 = vsyncpa [#allocation9], 1 }
 0x879   :  { %1951 = vsyncpa [#allocation12], 1 }
 0x87a   :  { %1952 = vsyncpa [#allocation4], 1 }
 0x87b   :  { %1954 = vsyncpa [#allocation4 + $0x1], 1 }

</bundles_post_ra>
